<compile_context>
chip_gen: v5e
topology: v5e:2x2
jax: 0.10.0
libtpu: 0.0.40
codegen_flags: <defaults>
</compile_context>

<pallas_src>
import functools

import jax
import jax.numpy as jnp
from jax.experimental import pallas as pl
from jax.experimental.pallas import tpu as pltpu


def _knn_kernel(x_ref, y_ref, rel_ref, idx_ref, *, topk, m_pts, mxu_dtype):
    # x_ref  : (1, TILE_N, C)   un-normalised features for this (tile, batch)
    # y_ref  : (1, C, M)
    # rel_ref: (1, TILE_N, M)
    # idx_ref: (1, topk, TILE_N) int32   (lane-dense: neighbours on lanes)
    xb = x_ref[0].astype(jnp.float32)          # (TILE_N, C)
    yb = y_ref[0].astype(jnp.float32)          # (C, M)
    rel = rel_ref[0].astype(jnp.float32)       # (TILE_N, M)

    # F.normalize(p=2, dim=1): v / max(||v||, 1e-12) == v * rsqrt(max(sumsq, 1e-24))
    xn = xb * jax.lax.rsqrt(
        jnp.maximum(jnp.sum(xb * xb, axis=1, keepdims=True), 1e-24))
    yn = yb * jax.lax.rsqrt(
        jnp.maximum(jnp.sum(yb * yb, axis=0, keepdims=True), 1e-24))

    # Cosine similarity + positional bias; f32 accumulation on the MXU.
    dist = jnp.dot(xn.astype(mxu_dtype), yn.astype(mxu_dtype),
                   preferred_element_type=jnp.float32) + rel      # (TILE_N, M)

    tile_n = dist.shape[0]

    # ---- pack (similarity, column) into one sortable int32 key -------------
    # Order-preserving f32 -> signed int32 map (larger float => larger int).
    bits = pltpu.bitcast(dist, jnp.int32)
    key = jnp.where(bits < 0, bits ^ jnp.int32(0x7FFFFFFF), bits)
    # Low `ib` bits carry the reversed column index so a single max recovers
    # both the best value and the first-occurrence argmax (ties -> lowest col).
    ib = max(1, (m_pts - 1).bit_length())
    low_mask = jnp.int32((1 << ib) - 1)
    col = jax.lax.broadcasted_iota(jnp.int32, (tile_n, m_pts), 1)
    packed = (key & jnp.int32(-(1 << ib))) | (jnp.int32(m_pts - 1) - col)

    masked_val = jnp.int32(jnp.iinfo(jnp.int32).min)   # below every valid key
    for kk in range(topk):
        kmax = jnp.max(packed, axis=-1)                       # (TILE_N,) one reduce / k
        best = jnp.int32(m_pts - 1) - (kmax & low_mask)       # winning column index
        idx_ref[0, kk, :] = best                              # lane-dense row store
        if kk + 1 < topk:
            packed = jnp.where(packed == kmax[:, None], masked_val, packed)


def dense_dilated_knn_graph(x, y, relative_pos, k=9, dilation=1, *,
                            tile_n=256, mxu_dtype=None):
    """JAX/Pallas equivalent of DenseDilatedKnnGraph.forward.

    x: (B, C, N, 1), y: (B, C, M, 1), relative_pos: (1, N, M)
    returns edge_index: (2, B, N, k) int32
    """
    B, C, N, _ = x.shape
    M = y.shape[2]
    K = k * dilation
    tile_n = min(tile_n, N)
    n_tiles = pl.cdiv(N, tile_n)

    if mxu_dtype is None:
        mxu_dtype = x.dtype   # bf16 inputs -> full-rate bf16 MXU on v6e/v7x

    # TODO(synk): for very large M, stream M in chunks with a running top-K
    # scratch instead of materialising the full (TILE_N, M) similarity tile.

    # (B, N, C) view of x; keeping this cheap host transpose (x is the smallest
    # operand) avoids relying on transposed-LHS matmul lowering in-kernel.
    x_t = jnp.transpose(x[..., 0], (0, 2, 1))
    y_s = y[..., 0]                            # (B, C, M)

    kernel = functools.partial(_knn_kernel, topk=K, m_pts=M, mxu_dtype=mxu_dtype)

    # Grid: (N-tiles, B); B varies fastest so the relative_pos tile is fetched
    # once per N-tile and reused across the batch.  Axes are independent.
    nn_idx_t = pl.pallas_call(
        kernel,
        out_shape=jax.ShapeDtypeStruct((B, K, N), jnp.int32),
        grid=(n_tiles, B),
        in_specs=[
            pl.BlockSpec((1, tile_n, C), lambda i, b: (b, i, 0)),
            pl.BlockSpec((1, C, M),      lambda i, b: (b, 0, 0)),
            pl.BlockSpec((1, tile_n, M), lambda i, b: (0, i, 0)),
        ],
        out_specs=pl.BlockSpec((1, K, tile_n), lambda i, b: (b, 0, i)),
        compiler_params=pltpu.CompilerParams(
            dimension_semantics=("parallel", "parallel"),
            vmem_limit_bytes=48 * 1024 * 1024),
    )(x_t, y_s, relative_pos)

    nn_idx = jnp.transpose(nn_idx_t, (0, 2, 1))        # (B, N, K)
    center_idx = jnp.broadcast_to(
        jnp.arange(N, dtype=jnp.int32)[None, :, None], (B, N, K))
    edge_index = jnp.stack([nn_idx, center_idx], axis=0)   # (2, B, N, K)
    return edge_index[:, :, :, ::dilation]                 # dilation slicing


def _reference(x, y, relative_pos, k=9, dilation=1):
    """Pure-JAX reference; returns (dist, edge_index)."""
    xs = x[..., 0].astype(jnp.float32)   # (B, C, N)
    ys = y[..., 0].astype(jnp.float32)   # (B, C, M)
    xn = xs * jax.lax.rsqrt(
        jnp.maximum(jnp.sum(xs * xs, axis=1, keepdims=True), 1e-24))
    yn = ys * jax.lax.rsqrt(
        jnp.maximum(jnp.sum(ys * ys, axis=1, keepdims=True), 1e-24))
    dist = jnp.einsum("bcn,bcm->bnm", xn, yn) + relative_pos.astype(jnp.float32)
    _, nn_idx = jax.lax.top_k(dist, k * dilation)
    B, N = dist.shape[0], dist.shape[1]
    center = jnp.broadcast_to(
        jnp.arange(N, dtype=nn_idx.dtype)[None, :, None], nn_idx.shape)
    ei = jnp.stack([nn_idx, center], axis=0)
    return dist, ei[:, :, :, ::dilation]


if __name__ == "__main__":
    key = jax.random.PRNGKey(0)
    kx, ky, kr = jax.random.split(key, 3)

    B, C, N, M = 2, 4, 16, 16
    k, dilation = 9, 1

    x = jax.random.normal(kx, (B, C, N, 1), dtype=jnp.float32)
    y = jax.random.normal(ky, (B, C, M, 1), dtype=jnp.float32)
    relative_pos = jax.random.normal(kr, (1, N, M), dtype=jnp.float32) * 0.1

    edge_index = dense_dilated_knn_graph(x, y, relative_pos, k=k, dilation=dilation)
    edge_index = jax.block_until_ready(edge_index)

    assert edge_index.shape == (2, B, N, k), edge_index.shape
    assert edge_index.dtype == jnp.int32

    dist_ref, ref_ei = _reference(x, y, relative_pos, k=k, dilation=dilation)

    # Center indices must match exactly.
    assert (edge_index[1] == ref_ei[1].astype(jnp.int32)).all()

    # Neighbour indices: validate via gathered similarity values (robust to
    # near-tie reordering from the packed-key low bits / matmul path), plus
    # range and per-row distinctness checks.
    nn_ker = edge_index[0]          # (B, N, k)
    nn_ref = ref_ei[0]
    assert (nn_ker >= 0).all() and (nn_ker < M).all()
    assert (jnp.diff(jnp.sort(nn_ker, axis=-1), axis=-1) > 0).all()
    v_ker = jnp.take_along_axis(dist_ref, nn_ker, axis=-1)
    v_ref = jnp.take_along_axis(dist_ref, nn_ref, axis=-1)
    assert jnp.max(jnp.abs(v_ker - v_ref)) <= 1e-4, "top-k values mismatch"

    print("KERNEL_OK")
</pallas_src>

<mosaic_0001>
module attributes {stable_mosaic.version = 11 : i64} {
  func.func @_knn_kernel(%arg0: i32, %arg1: i32, %arg2: memref<1x16x4xf32, #tpu.memory_space<vmem>>, %arg3: memref<1x4x16xf32, #tpu.memory_space<vmem>>, %arg4: memref<1x16x16xf32, #tpu.memory_space<vmem>>, %arg5: memref<1x9x16xi32, #tpu.memory_space<vmem>>) attributes {dimension_semantics = [#tpu.dimension_semantics<parallel>, #tpu.dimension_semantics<parallel>], iteration_bounds = array<i64: 1, 2>, scalar_prefetch = 0 : i64, scratch_operands = 0 : i64, tpu.core_type = #tpu.core_type<tc>, window_params = [{transform_indices = @transform_0, window_bounds = array<i64: 1, 16, 4>}, {transform_indices = @transform_1, window_bounds = array<i64: 1, 4, 16>}, {transform_indices = @transform_2, window_bounds = array<i64: 1, 16, 16>}, {transform_indices = @transform_3, window_bounds = array<i64: 1, 9, 16>}]} {
    %c0 = arith.constant 0 : index
    %c0_0 = arith.constant 0 : index
    %c0_1 = arith.constant 0 : index
    %0 = vector.load %arg2[%c0, %c0_0, %c0_1] : memref<1x16x4xf32, #tpu.memory_space<vmem>>, vector<1x16x4xf32>
    %1 = vector.shape_cast %0 : vector<1x16x4xf32> to vector<16x4xf32>
    %c0_2 = arith.constant 0 : index
    %c0_3 = arith.constant 0 : index
    %c0_4 = arith.constant 0 : index
    %2 = vector.load %arg3[%c0_2, %c0_3, %c0_4] : memref<1x4x16xf32, #tpu.memory_space<vmem>>, vector<1x4x16xf32>
    %3 = vector.shape_cast %2 : vector<1x4x16xf32> to vector<4x16xf32>
    %c0_5 = arith.constant 0 : index
    %c0_6 = arith.constant 0 : index
    %c0_7 = arith.constant 0 : index
    %4 = vector.load %arg4[%c0_5, %c0_6, %c0_7] : memref<1x16x16xf32, #tpu.memory_space<vmem>>, vector<1x16x16xf32>
    %5 = vector.shape_cast %4 : vector<1x16x16xf32> to vector<16x16xf32>
    %6 = arith.mulf %1, %1 : vector<16x4xf32>
    %cst = arith.constant dense<0.000000e+00> : vector<16xf32>
    %7 = vector.multi_reduction <add>, %6, %cst [1] : vector<16x4xf32> to vector<16xf32>
    %8 = vector.shape_cast %7 : vector<16xf32> to vector<16x1xf32>
    %cst_8 = arith.constant 1.000000e-24 : f32
    %9 = vector.broadcast %cst_8 : f32 to vector<16x1xf32>
    %10 = arith.maximumf %8, %9 : vector<16x1xf32>
    %11 = math.rsqrt %10 : vector<16x1xf32>
    %12 = vector.broadcast %11 : vector<16x1xf32> to vector<16x4xf32>
    %13 = arith.mulf %1, %12 : vector<16x4xf32>
    %14 = arith.mulf %3, %3 : vector<4x16xf32>
    %cst_9 = arith.constant dense<0.000000e+00> : vector<16xf32>
    %15 = vector.multi_reduction <add>, %14, %cst_9 [0] : vector<4x16xf32> to vector<16xf32>
    %16 = vector.shape_cast %15 : vector<16xf32> to vector<1x16xf32>
    %cst_10 = arith.constant 1.000000e-24 : f32
    %17 = vector.broadcast %cst_10 : f32 to vector<1x16xf32>
    %18 = arith.maximumf %16, %17 : vector<1x16xf32>
    %19 = math.rsqrt %18 : vector<1x16xf32>
    %20 = vector.broadcast %19 : vector<1x16xf32> to vector<4x16xf32>
    %21 = arith.mulf %3, %20 : vector<4x16xf32>
    %cst_11 = arith.constant dense<0.000000e+00> : vector<16x16xf32>
    %22 = tpu.matmul %13, %21, %cst_11 {dimension_numbers = #tpu.dot_dimension_numbers<[1], [0], [0], [1], [0, 0, 1, 1], [], []>} : vector<16x4xf32>, vector<4x16xf32>, vector<16x16xf32> -> vector<16x16xf32>
    %23 = arith.addf %22, %5 : vector<16x16xf32>
    %24 = tpu.bitcast %23 : vector<16x16xf32> -> vector<16x16xi32>
    %c0_i32 = arith.constant 0 : i32
    %25 = vector.broadcast %c0_i32 : i32 to vector<16x16xi32>
    %26 = arith.cmpi slt, %24, %25 : vector<16x16xi32>
    %c2147483647_i32 = arith.constant 2147483647 : i32
    %27 = vector.broadcast %c2147483647_i32 : i32 to vector<16x16xi32>
    %28 = arith.xori %24, %27 : vector<16x16xi32>
    %29 = arith.select %26, %28, %24 : vector<16x16xi1>, vector<16x16xi32>
    %30 = tpu.iota {dimensions = array<i32: 1>} : vector<16x16xi32>
    %c-16_i32 = arith.constant -16 : i32
    %31 = vector.broadcast %c-16_i32 : i32 to vector<16x16xi32>
    %32 = arith.andi %29, %31 : vector<16x16xi32>
    %c15_i32 = arith.constant 15 : i32
    %33 = vector.broadcast %c15_i32 : i32 to vector<16x16xi32>
    %34 = arith.subi %33, %30 : vector<16x16xi32>
    %35 = arith.ori %32, %34 : vector<16x16xi32>
    %cst_12 = arith.constant dense<-2147483648> : vector<16xi32>
    %36 = vector.multi_reduction <maxsi>, %35, %cst_12 [1] : vector<16x16xi32> to vector<16xi32>
    %c15_i32_13 = arith.constant 15 : i32
    %37 = vector.broadcast %c15_i32_13 : i32 to vector<16xi32>
    %38 = arith.andi %36, %37 : vector<16xi32>
    %c15_i32_14 = arith.constant 15 : i32
    %39 = vector.broadcast %c15_i32_14 : i32 to vector<16xi32>
    %40 = arith.subi %39, %38 : vector<16xi32>
    %c0_15 = arith.constant 0 : index
    %c0_16 = arith.constant 0 : index
    %c0_17 = arith.constant 0 : index
    %41 = vector.load %arg5[%c0_15, %c0_16, %c0_17] : memref<1x9x16xi32, #tpu.memory_space<vmem>>, vector<1x1x16xi32>
    %42 = vector.shape_cast %41 : vector<1x1x16xi32> to vector<16xi32>
    %43 = vector.shape_cast %40 : vector<16xi32> to vector<1x1x16xi32>
    tpu.vector_store %arg5[%c0_15, %c0_16, %c0_17], %43 {strides = array<i32>} : memref<1x9x16xi32, #tpu.memory_space<vmem>>, vector<1x1x16xi32>,
    %44 = vector.shape_cast %36 : vector<16xi32> to vector<16x1xi32>
    %45 = vector.broadcast %44 : vector<16x1xi32> to vector<16x16xi32>
    %46 = arith.cmpi eq, %35, %45 : vector<16x16xi32>
    %c-2147483648_i32 = arith.constant -2147483648 : i32
    %47 = vector.broadcast %c-2147483648_i32 : i32 to vector<16x16xi32>
    %48 = arith.select %46, %47, %35 : vector<16x16xi1>, vector<16x16xi32>
    %cst_18 = arith.constant dense<-2147483648> : vector<16xi32>
    %49 = vector.multi_reduction <maxsi>, %48, %cst_18 [1] : vector<16x16xi32> to vector<16xi32>
    %c15_i32_19 = arith.constant 15 : i32
    %50 = vector.broadcast %c15_i32_19 : i32 to vector<16xi32>
    %51 = arith.andi %49, %50 : vector<16xi32>
    %c15_i32_20 = arith.constant 15 : i32
    %52 = vector.broadcast %c15_i32_20 : i32 to vector<16xi32>
    %53 = arith.subi %52, %51 : vector<16xi32>
    %c0_21 = arith.constant 0 : index
    %c1 = arith.constant 1 : index
    %c0_22 = arith.constant 0 : index
    %54 = vector.load %arg5[%c0_21, %c1, %c0_22] : memref<1x9x16xi32, #tpu.memory_space<vmem>>, vector<1x1x16xi32>
    %55 = vector.shape_cast %54 : vector<1x1x16xi32> to vector<16xi32>
    %56 = vector.shape_cast %53 : vector<16xi32> to vector<1x1x16xi32>
    tpu.vector_store %arg5[%c0_21, %c1, %c0_22], %56 {strides = array<i32>} : memref<1x9x16xi32, #tpu.memory_space<vmem>>, vector<1x1x16xi32>,
    %57 = vector.shape_cast %49 : vector<16xi32> to vector<16x1xi32>
    %58 = vector.broadcast %57 : vector<16x1xi32> to vector<16x16xi32>
    %59 = arith.cmpi eq, %48, %58 : vector<16x16xi32>
    %c-2147483648_i32_23 = arith.constant -2147483648 : i32
    %60 = vector.broadcast %c-2147483648_i32_23 : i32 to vector<16x16xi32>
    %61 = arith.select %59, %60, %48 : vector<16x16xi1>, vector<16x16xi32>
    %cst_24 = arith.constant dense<-2147483648> : vector<16xi32>
    %62 = vector.multi_reduction <maxsi>, %61, %cst_24 [1] : vector<16x16xi32> to vector<16xi32>
    %c15_i32_25 = arith.constant 15 : i32
    %63 = vector.broadcast %c15_i32_25 : i32 to vector<16xi32>
    %64 = arith.andi %62, %63 : vector<16xi32>
    %c15_i32_26 = arith.constant 15 : i32
    %65 = vector.broadcast %c15_i32_26 : i32 to vector<16xi32>
    %66 = arith.subi %65, %64 : vector<16xi32>
    %c0_27 = arith.constant 0 : index
    %c2 = arith.constant 2 : index
    %c0_28 = arith.constant 0 : index
    %67 = vector.load %arg5[%c0_27, %c2, %c0_28] : memref<1x9x16xi32, #tpu.memory_space<vmem>>, vector<1x1x16xi32>
    %68 = vector.shape_cast %67 : vector<1x1x16xi32> to vector<16xi32>
    %69 = vector.shape_cast %66 : vector<16xi32> to vector<1x1x16xi32>
    tpu.vector_store %arg5[%c0_27, %c2, %c0_28], %69 {strides = array<i32>} : memref<1x9x16xi32, #tpu.memory_space<vmem>>, vector<1x1x16xi32>,
    %70 = vector.shape_cast %62 : vector<16xi32> to vector<16x1xi32>
    %71 = vector.broadcast %70 : vector<16x1xi32> to vector<16x16xi32>
    %72 = arith.cmpi eq, %61, %71 : vector<16x16xi32>
    %c-2147483648_i32_29 = arith.constant -2147483648 : i32
    %73 = vector.broadcast %c-2147483648_i32_29 : i32 to vector<16x16xi32>
    %74 = arith.select %72, %73, %61 : vector<16x16xi1>, vector<16x16xi32>
    %cst_30 = arith.constant dense<-2147483648> : vector<16xi32>
    %75 = vector.multi_reduction <maxsi>, %74, %cst_30 [1] : vector<16x16xi32> to vector<16xi32>
    %c15_i32_31 = arith.constant 15 : i32
    %76 = vector.broadcast %c15_i32_31 : i32 to vector<16xi32>
    %77 = arith.andi %75, %76 : vector<16xi32>
    %c15_i32_32 = arith.constant 15 : i32
    %78 = vector.broadcast %c15_i32_32 : i32 to vector<16xi32>
    %79 = arith.subi %78, %77 : vector<16xi32>
    %c0_33 = arith.constant 0 : index
    %c3 = arith.constant 3 : index
    %c0_34 = arith.constant 0 : index
    %80 = vector.load %arg5[%c0_33, %c3, %c0_34] : memref<1x9x16xi32, #tpu.memory_space<vmem>>, vector<1x1x16xi32>
    %81 = vector.shape_cast %80 : vector<1x1x16xi32> to vector<16xi32>
    %82 = vector.shape_cast %79 : vector<16xi32> to vector<1x1x16xi32>
    tpu.vector_store %arg5[%c0_33, %c3, %c0_34], %82 {strides = array<i32>} : memref<1x9x16xi32, #tpu.memory_space<vmem>>, vector<1x1x16xi32>,
    %83 = vector.shape_cast %75 : vector<16xi32> to vector<16x1xi32>
    %84 = vector.broadcast %83 : vector<16x1xi32> to vector<16x16xi32>
    %85 = arith.cmpi eq, %74, %84 : vector<16x16xi32>
    %c-2147483648_i32_35 = arith.constant -2147483648 : i32
    %86 = vector.broadcast %c-2147483648_i32_35 : i32 to vector<16x16xi32>
    %87 = arith.select %85, %86, %74 : vector<16x16xi1>, vector<16x16xi32>
    %cst_36 = arith.constant dense<-2147483648> : vector<16xi32>
    %88 = vector.multi_reduction <maxsi>, %87, %cst_36 [1] : vector<16x16xi32> to vector<16xi32>
    %c15_i32_37 = arith.constant 15 : i32
    %89 = vector.broadcast %c15_i32_37 : i32 to vector<16xi32>
    %90 = arith.andi %88, %89 : vector<16xi32>
    %c15_i32_38 = arith.constant 15 : i32
    %91 = vector.broadcast %c15_i32_38 : i32 to vector<16xi32>
    %92 = arith.subi %91, %90 : vector<16xi32>
    %c0_39 = arith.constant 0 : index
    %c4 = arith.constant 4 : index
    %c0_40 = arith.constant 0 : index
    %93 = vector.load %arg5[%c0_39, %c4, %c0_40] : memref<1x9x16xi32, #tpu.memory_space<vmem>>, vector<1x1x16xi32>
    %94 = vector.shape_cast %93 : vector<1x1x16xi32> to vector<16xi32>
    %95 = vector.shape_cast %92 : vector<16xi32> to vector<1x1x16xi32>
    tpu.vector_store %arg5[%c0_39, %c4, %c0_40], %95 {strides = array<i32>} : memref<1x9x16xi32, #tpu.memory_space<vmem>>, vector<1x1x16xi32>,
    %96 = vector.shape_cast %88 : vector<16xi32> to vector<16x1xi32>
    %97 = vector.broadcast %96 : vector<16x1xi32> to vector<16x16xi32>
    %98 = arith.cmpi eq, %87, %97 : vector<16x16xi32>
    %c-2147483648_i32_41 = arith.constant -2147483648 : i32
    %99 = vector.broadcast %c-2147483648_i32_41 : i32 to vector<16x16xi32>
    %100 = arith.select %98, %99, %87 : vector<16x16xi1>, vector<16x16xi32>
    %cst_42 = arith.constant dense<-2147483648> : vector<16xi32>
    %101 = vector.multi_reduction <maxsi>, %100, %cst_42 [1] : vector<16x16xi32> to vector<16xi32>
    %c15_i32_43 = arith.constant 15 : i32
    %102 = vector.broadcast %c15_i32_43 : i32 to vector<16xi32>
    %103 = arith.andi %101, %102 : vector<16xi32>
    %c15_i32_44 = arith.constant 15 : i32
    %104 = vector.broadcast %c15_i32_44 : i32 to vector<16xi32>
    %105 = arith.subi %104, %103 : vector<16xi32>
    %c0_45 = arith.constant 0 : index
    %c5 = arith.constant 5 : index
    %c0_46 = arith.constant 0 : index
    %106 = vector.load %arg5[%c0_45, %c5, %c0_46] : memref<1x9x16xi32, #tpu.memory_space<vmem>>, vector<1x1x16xi32>
    %107 = vector.shape_cast %106 : vector<1x1x16xi32> to vector<16xi32>
    %108 = vector.shape_cast %105 : vector<16xi32> to vector<1x1x16xi32>
    tpu.vector_store %arg5[%c0_45, %c5, %c0_46], %108 {strides = array<i32>} : memref<1x9x16xi32, #tpu.memory_space<vmem>>, vector<1x1x16xi32>,
    %109 = vector.shape_cast %101 : vector<16xi32> to vector<16x1xi32>
    %110 = vector.broadcast %109 : vector<16x1xi32> to vector<16x16xi32>
    %111 = arith.cmpi eq, %100, %110 : vector<16x16xi32>
    %c-2147483648_i32_47 = arith.constant -2147483648 : i32
    %112 = vector.broadcast %c-2147483648_i32_47 : i32 to vector<16x16xi32>
    %113 = arith.select %111, %112, %100 : vector<16x16xi1>, vector<16x16xi32>
    %cst_48 = arith.constant dense<-2147483648> : vector<16xi32>
    %114 = vector.multi_reduction <maxsi>, %113, %cst_48 [1] : vector<16x16xi32> to vector<16xi32>
    %c15_i32_49 = arith.constant 15 : i32
    %115 = vector.broadcast %c15_i32_49 : i32 to vector<16xi32>
    %116 = arith.andi %114, %115 : vector<16xi32>
    %c15_i32_50 = arith.constant 15 : i32
    %117 = vector.broadcast %c15_i32_50 : i32 to vector<16xi32>
    %118 = arith.subi %117, %116 : vector<16xi32>
    %c0_51 = arith.constant 0 : index
    %c6 = arith.constant 6 : index
    %c0_52 = arith.constant 0 : index
    %119 = vector.load %arg5[%c0_51, %c6, %c0_52] : memref<1x9x16xi32, #tpu.memory_space<vmem>>, vector<1x1x16xi32>
    %120 = vector.shape_cast %119 : vector<1x1x16xi32> to vector<16xi32>
    %121 = vector.shape_cast %118 : vector<16xi32> to vector<1x1x16xi32>
    tpu.vector_store %arg5[%c0_51, %c6, %c0_52], %121 {strides = array<i32>} : memref<1x9x16xi32, #tpu.memory_space<vmem>>, vector<1x1x16xi32>,
    %122 = vector.shape_cast %114 : vector<16xi32> to vector<16x1xi32>
    %123 = vector.broadcast %122 : vector<16x1xi32> to vector<16x16xi32>
    %124 = arith.cmpi eq, %113, %123 : vector<16x16xi32>
    %c-2147483648_i32_53 = arith.constant -2147483648 : i32
    %125 = vector.broadcast %c-2147483648_i32_53 : i32 to vector<16x16xi32>
    %126 = arith.select %124, %125, %113 : vector<16x16xi1>, vector<16x16xi32>
    %cst_54 = arith.constant dense<-2147483648> : vector<16xi32>
    %127 = vector.multi_reduction <maxsi>, %126, %cst_54 [1] : vector<16x16xi32> to vector<16xi32>
    %c15_i32_55 = arith.constant 15 : i32
    %128 = vector.broadcast %c15_i32_55 : i32 to vector<16xi32>
    %129 = arith.andi %127, %128 : vector<16xi32>
    %c15_i32_56 = arith.constant 15 : i32
    %130 = vector.broadcast %c15_i32_56 : i32 to vector<16xi32>
    %131 = arith.subi %130, %129 : vector<16xi32>
    %c0_57 = arith.constant 0 : index
    %c7 = arith.constant 7 : index
    %c0_58 = arith.constant 0 : index
    %132 = vector.load %arg5[%c0_57, %c7, %c0_58] : memref<1x9x16xi32, #tpu.memory_space<vmem>>, vector<1x1x16xi32>
    %133 = vector.shape_cast %132 : vector<1x1x16xi32> to vector<16xi32>
    %134 = vector.shape_cast %131 : vector<16xi32> to vector<1x1x16xi32>
    tpu.vector_store %arg5[%c0_57, %c7, %c0_58], %134 {strides = array<i32>} : memref<1x9x16xi32, #tpu.memory_space<vmem>>, vector<1x1x16xi32>,
    %135 = vector.shape_cast %127 : vector<16xi32> to vector<16x1xi32>
    %136 = vector.broadcast %135 : vector<16x1xi32> to vector<16x16xi32>
    %137 = arith.cmpi eq, %126, %136 : vector<16x16xi32>
    %c-2147483648_i32_59 = arith.constant -2147483648 : i32
    %138 = vector.broadcast %c-2147483648_i32_59 : i32 to vector<16x16xi32>
    %139 = arith.select %137, %138, %126 : vector<16x16xi1>, vector<16x16xi32>
    %cst_60 = arith.constant dense<-2147483648> : vector<16xi32>
    %140 = vector.multi_reduction <maxsi>, %139, %cst_60 [1] : vector<16x16xi32> to vector<16xi32>
    %c15_i32_61 = arith.constant 15 : i32
    %141 = vector.broadcast %c15_i32_61 : i32 to vector<16xi32>
    %142 = arith.andi %140, %141 : vector<16xi32>
    %c15_i32_62 = arith.constant 15 : i32
    %143 = vector.broadcast %c15_i32_62 : i32 to vector<16xi32>
    %144 = arith.subi %143, %142 : vector<16xi32>
    %c0_63 = arith.constant 0 : index
    %c8 = arith.constant 8 : index
    %c0_64 = arith.constant 0 : index
    %145 = vector.load %arg5[%c0_63, %c8, %c0_64] : memref<1x9x16xi32, #tpu.memory_space<vmem>>, vector<1x1x16xi32>
    %146 = vector.shape_cast %145 : vector<1x1x16xi32> to vector<16xi32>
    %147 = vector.shape_cast %144 : vector<16xi32> to vector<1x1x16xi32>
    tpu.vector_store %arg5[%c0_63, %c8, %c0_64], %147 {strides = array<i32>} : memref<1x9x16xi32, #tpu.memory_space<vmem>>, vector<1x1x16xi32>,
    return
  }
  func.func @transform_0(%arg0: i32, %arg1: i32) -> (i32, i32, i32) {
    %c0_i32 = arith.constant 0 : i32
    %c0_i32_0 = arith.constant 0 : i32
    return %arg1, %arg0, %c0_i32 : i32, i32, i32
  }
  func.func @transform_1(%arg0: i32, %arg1: i32) -> (i32, i32, i32) {
    %c0_i32 = arith.constant 0 : i32
    %c0_i32_0 = arith.constant 0 : i32
    %c0_i32_1 = arith.constant 0 : i32
    return %arg1, %c0_i32, %c0_i32_0 : i32, i32, i32
  }
  func.func @transform_2(%arg0: i32, %arg1: i32) -> (i32, i32, i32) {
    %c0_i32 = arith.constant 0 : i32
    %c0_i32_0 = arith.constant 0 : i32
    %c0_i32_1 = arith.constant 0 : i32
    return %c0_i32, %arg0, %c0_i32_0 : i32, i32, i32
  }
  func.func @transform_3(%arg0: i32, %arg1: i32) -> (i32, i32, i32) {
    %c0_i32 = arith.constant 0 : i32
    %c0_i32_0 = arith.constant 0 : i32
    return %arg1, %c0_i32, %arg0 : i32, i32, i32
  }
}

</mosaic_0001>

<bundles_post_ra>
// kernel: tpu_custom_call.1
= control target key start
LH: loop header
LB: loop body
LE: loop exit
PB: predicated region body
PF: predicated region fallthrough
CT: control target
= control target key end

     0   :  { %s935_s12 = smov 0   ;;  %s937_s13 = smov 0   ;;  %s1065_s0 = inlined_call_operand.vmem [shape: f32[2,16,4], index: 0, kind: input, shape index: {}]   ;;  %s1066_s1 = inlined_call_operand.vmem [shape: f32[2,4,16], index: 1, kind: input, shape index: {}]   ;;  %s1067_s2 = inlined_call_operand.vmem [shape: f32[1,16,16], index: 2, kind: input, shape index: {}]   ;;  %s1068_s3 = inlined_call_operand.vmem [shape: s32[2,9,16], index: 3, kind: output, shape index: {}]  }
   0x1   :  { %s939_s14 = smov 0  }
   0x2 LB: > { %s22_s15 = sadd.s32 1, %s909_s13  ;;  %p847_p0 = scmp.ge.s32.totalorder %s913_s14, 1  ;;  %s913_s14 = sphi %s939_s14, %s13_s14   ;;  %s909_s13 = sphi %s937_s13, %s1070_s13   ;;  %s905_s12 = sphi %s935_s12, %s1069_s12  }
   0x3   : > { %p23_p1 = scmp.ge.s32.totalorder %s22_s15, 2  ;;  %p178_p2 = scmp.lt.s32.totalorder %s913_s14, 3 }
   0x5   : > { %s1072_s15 = smov (%p23_p1, %s22_s15), 0  ;;  %p179_p3 = pnand %p847_p0, %p178_p2 }
   0x6   : > { %p219_p4 = scmp.lt.s32.totalorder (!%p179_p3), %s905_s12, 1 }
   0x7   : > { %182 = sbr.rel (%p179_p3) target bundleno = 2511 (0x9cf), region = 32 }
   0xc   : > { %s1074_s12 = smov (!%p219_p4, %s905_s12), 1  ;;  %vm253_vm0 = vcmask 31744   ;;  %vm285_vm1 = vcmask 125952   ;;  %vm311_vm5 = vcmask 1043456   ;;  %v346_v44 = vlaneseq  ;;  %v249_v45 = vld [vmem:[%s1067_s2] sm:$0xff]  ;;  %v250_v53 = vld [vmem:[%s1067_s2 + $0x8] sm:$0xff] }
   0xd   : > { %s858_s16 = sshll.u32 %s1074_s12, 4  ;;  %s850_s20 = sshll.u32 %s1074_s12, 2  ;;  %vm353_vm13 = vcmask 130048  }
   0xe   : > { %s226_s19 = scalar_lea.vmem %s1065_s0, %s858_s16  ;;  %s231_s23 = scalar_lea.vmem %s1066_s1, %s850_s20  ;;  %v977_v47 = vand.u32 127, %v346_v44 }
   0xf   : > { %v246_v0 = vld [vmem:[%s226_s19] sm:$0xff]  ;;  %v961_v2 = vld [vmem:[%s226_s19 + $0x8] sm:$0xff]  ;;  %s995_s30 = scalar_lea.vmem %s1068_s3, %s858_s16 }
  0x10   : > { %v251_v1 = vmul.f32 %v246_v0, %v246_v0  ;;  %v252_v4 = vmul.f32 %v961_v2, %v961_v2  ;;  %v248_v6 = vld [vmem:[%s231_s23] sm:$0xf]  ;;  %v350_v50 = vsub.s32 15, %v977_v47 }
  0x11   : > { %v284_v7 = vmul.f32 %v248_v6, %v248_v6 }
  0x12   : > { %v254_v3 = vsel %vm253_vm0, %v251_v1, 0.0  ;;  %v257_v5 = vsel %vm253_vm0, %v252_v4, 0.0 }
  0x13   : > { %255 = vadd.xlane.f32.xlu0 %v254_v3  ;;  %v286_v8 = vsel %vm285_vm1, %v284_v7, 0.0 }
  0x14   : > { %v287_v9 = vrot.slane %v286_v8, 4 }
  0x16   : > { %v288_v10 = vadd.f32 %v287_v9, %v286_v8 }
  0x18   : > { %v289_v11 = vrot.slane %v288_v10, 2 }
  0x1a   : > { %v290_v12 = vadd.f32 %v289_v11, %v288_v10 }
  0x1b   : > { %258 = vadd.xlane.f32.xlu0 %v257_v5 }
  0x1c   : > { %v291_v13 = vrot.slane %v290_v12, 1 }
  0x1e   : > { %v292_v14 = vadd.f32 %v291_v13, %v290_v12 }
  0x20   : > { %v293_v15 = vmax.f32 %v292_v14, 1e-24 }
  0x22   : > { %885 = vrsqrt.f32 %v293_v15  ;;  %vm300_vm2 = vweird.f32 %v293_v15 }
  0x28   : > { %v886_v16 = vpop.eup %885 }
  0x29   : > { %v295_v17 = vmul.f32 %v886_v16, %v293_v15  ;;  %vm301_vm3 = vweird.f32 %v886_v16 }
  0x2a   : > { %vm302_vm4 = vmor %vm300_vm2, %vm301_vm3  ;;  %vm391_vm3 = vcmask 130112  }
  0x2b   : > { %v296_v18 = vmul.f32 %v886_v16, %v295_v17 }
  0x2d   : > { %v297_v19 = vmul.f32 0.5, %v296_v18 }
  0x2f   : > { %v298_v20 = vsub.f32 1.5, %v297_v19 }
  0x31   : > { %v299_v21 = vmul.f32 %v886_v16, %v298_v20 }
  0x33   : > { %v303_v22 = vsel %vm302_vm4, %v886_v16, %v299_v21  ;;  %vm393_vm4 = vcmask 122880  }
  0x34   : > { %v304_v23 = vmul.f32 %v303_v22, %v248_v6 }
  0x36   : > { %853 = vmatpush.msk.msra.mxu0 %vm311_vm5, %v304_v23  ;;  %860 = vmatpush.msk.msra.mxu1 %vm311_vm5, %v304_v23 }
  0x86   : > { %v256_v24 = vpop.xlane.xlu0 %255 }
  0x87   : > { %v260_v25 = vmax.f32 %v256_v24, 1e-24 }
  0x89   : > { %887 = vrsqrt.f32 %v260_v25  ;;  %vm268_vm7 = vweird.f32 %v260_v25 }
  0x8e   : > { %v259_v26 = vpop.xlane.xlu0 %258 }
  0x8f   : > { %v888_v27 = vpop.eup %887  ;;  %v261_v28 = vmax.f32 %v259_v26, 1e-24 }
  0x90   : > { %v263_v29 = vmul.f32 %v888_v27, %v260_v25  ;;  %vm269_vm6 = vweird.f32 %v888_v27 }
  0x91   : > { %889 = vrsqrt.f32 %v261_v28  ;;  %vm270_vm8 = vmor %vm268_vm7, %vm269_vm6  ;;  %vm278_vm10 = vweird.f32 %v261_v28 }
  0x92   : > { %v264_v30 = vmul.f32 %v888_v27, %v263_v29 }
  0x94   : > { %v265_v31 = vmul.f32 0.5, %v264_v30 }
  0x96   : > { %v266_v32 = vsub.f32 1.5, %v265_v31 }
  0x97   : > { %v890_v33 = vpop.eup %889 }
  0x98   : > { %v273_v34 = vmul.f32 %v890_v33, %v261_v28  ;;  %v267_v35 = vmul.f32 %v888_v27, %v266_v32  ;;  %vm279_vm9 = vweird.f32 %v890_v33 }
  0x99   : > { %vm280_vm11 = vmor %vm278_vm10, %vm279_vm9 }
  0x9a   : > { %v274_v36 = vmul.f32 %v890_v33, %v273_v34  ;;  %v271_v37 = vsel %vm270_vm8, %v888_v27, %v267_v35  ;;  %v987_v27 = vadd.s32 4294967288, %v977_v47 }
  0x9b   : > { %v282_v38 = vmul.f32 %v271_v37, %v246_v0 }
  0x9c   : > { %v275_v39 = vmul.f32 0.5, %v274_v36 }
  0x9d   : > { %854 = vmatmul.msk.f32.vlgmr.msra.gmra.mxu0 %vm253_vm0, %v282_v38 }
  0x9e   : > { %v276_v40 = vsub.f32 1.5, %v275_v39 }
  0xa0   : > { %v277_v41 = vmul.f32 %v890_v33, %v276_v40 }
  0xa2   : > { %v281_v42 = vsel %vm280_vm11, %v890_v33, %v277_v41 }
  0xa3   : > { %v283_v43 = vmul.f32 %v281_v42, %v961_v2 }
  0xa5   : > { %855 = vmatmul.msk.f32.vlgmr.msra.gmra.mxu1 %vm253_vm0, %v283_v43 }
 0x11a   : > { %v332_v46 = vpop.f32.mrf.mxu0 }
 0x11b   : > { %v333_v48 = vadd.f32 %v332_v46, %v249_v45 }
 0x11d   : > { %vm340_vm12 = vcmp.lt.s32.totalorder %v333_v48, 0  ;;  %v342_v49 = vxor.u32 2147483647, %v333_v48 }
 0x11f   : > { %v344_v51 = vsel %vm340_vm12, %v342_v49, %v333_v48 }
 0x120   : > { %v348_v52 = vand.u32 4294967280, %v344_v51 }
 0x122   : > { %v351_v54 = vor.u32 %v350_v50, %v348_v52  ;;  %v335_v55 = vpop.f32.mrf.mxu1 }
 0x123   : > { %v336_v56 = vadd.f32 %v335_v55, %v250_v53 }
 0x124   : > { %v354_v57 = vsel %vm353_vm13, %v351_v54, 2147483648 }
 0x125   : > { %vm341_vm14 = vcmp.lt.s32.totalorder %v336_v56, 0  ;;  %v343_v58 = vxor.u32 2147483647, %v336_v56  ;;  %v356_v59 = vshra.s32 %v354_v57, 16  ;;  %v355_v3 = vand.u32 65535, %v354_v57 }
 0x127   : > { %v345_v60 = vsel %vm341_vm14, %v343_v58, %v336_v56  ;;  %v358_v61 = vcvt.s32.f32 %v356_v59  ;;  %v357_v5 = vcvt.s32.f32 %v355_v3 }
 0x128   : > { %v349_v62 = vand.u32 4294967280, %v345_v60 }
 0x129   : > { %359 = vmax.xlane.f32.xlu1 %v358_v61 }
 0x12a   : > { %v352_v63 = vor.u32 %v350_v50, %v349_v62 }
 0x12c   : > { %v369_v0 = vsel %vm353_vm13, %v352_v63, 2147483648 }
 0x12d   : > { %v371_v1 = vshra.s32 %v369_v0, 16  ;;  %v370_v7 = vand.u32 65535, %v369_v0 }
 0x12f   : > { %v373_v2 = vcvt.s32.f32 %v371_v1  ;;  %v372_v9 = vcvt.s32.f32 %v370_v7 }
 0x131   : > { %374 = vmax.xlane.f32.xlu1 %v373_v2 }
 0x19c   : > { %v360_v4 = vpop.xlane.xlu1 %359 }
 0x19d   : > { %vm361_vm15 = vcmp.eq.f32.partialorder %v358_v61, %v360_v4  ;;  %v366_v11 = vcvt.f32.s32 %v360_v4 }
 0x19e   : > { %v362_v6 = vsel %vm361_vm15, %v357_v5, -inf }
 0x19f   : > { %363 = vmax.xlane.f32.xlu2 %v362_v6  ;;  %v367_v13 = vshll.u32 %v366_v11, 16 }
 0x1a4   : > { %v375_v8 = vpop.xlane.xlu1 %374 }
 0x1a5   : > { %vm376_vm0 = vcmp.eq.f32.partialorder %v373_v2, %v375_v8  ;;  %v381_v16 = vcvt.f32.s32 %v375_v8 }
 0x1a6   : > { %v377_v10 = vsel %vm376_vm0, %v372_v9, -inf }
 0x1a7   : > { %378 = vmax.xlane.f32.xlu2 %v377_v10  ;;  %v382_v21 = vshll.u32 %v381_v16, 16 }
 0x212   : > { %v364_v12 = vpop.xlane.xlu2 %363 }
 0x213   : > { %v365_v14 = vcvt.f32.s32 %v364_v12 }
 0x215   : > { %v368_v15 = vadd.s32 %v367_v13, %v365_v14 }
 0x217   : > { %vm395_vm1 = vcmp.eq.s32.totalorder %v351_v54, %v368_v15  ;;  %v384_v22 = vand.u32 15, %v368_v15 }
 0x218   : > { %v397_v17 = vsel %vm395_vm1, 2147483648, %v351_v54 }
 0x219   : > { %v399_v18 = vsel %vm353_vm13, %v397_v17, 2147483648  ;;  %v386_v26 = vsub.s32 15, %v384_v22 }
 0x21a   : > { %v379_v19 = vpop.xlane.xlu2 %378  ;;  %v401_v20 = vshra.s32 %v399_v18, 16  ;;  %v400_v37 = vand.u32 65535, %v399_v18 }
 0x21b   : > { %v380_v23 = vcvt.f32.s32 %v379_v19  ;;  %v388_v33 = vperm.slane %v386_v26, %v977_v47 }
 0x21c   : > { %v403_v24 = vcvt.s32.f32 %v401_v20  ;;  %v402_v39 = vcvt.s32.f32 %v400_v37 }
 0x21d   : > { %v383_v25 = vadd.s32 %v382_v21, %v380_v23 }
 0x21e   : > { %404 = vmax.xlane.f32.xlu0 %v403_v24 }
 0x21f   : > { %v385_v28 = vand.u32 15, %v383_v25  ;;  %vm396_vm2 = vcmp.eq.s32.totalorder %v352_v63, %v383_v25 }
 0x220   : > { %v398_v29 = vsel %vm396_vm2, 2147483648, %v352_v63 }
 0x221   : > { %v387_v30 = vsub.s32 15, %v385_v28  ;;  %v414_v31 = vsel %vm353_vm13, %v398_v29, 2147483648 }
 0x222   : > { %v416_v32 = vshra.s32 %v414_v31, 16  ;;  %v415_v41 = vand.u32 65535, %v414_v31 }
 0x223   : > { %v390_v34 = vperm.slane %v387_v30, %v987_v27 }
 0x224   : > { %v418_v35 = vcvt.s32.f32 %v416_v32  ;;  %v417_v43 = vcvt.s32.f32 %v415_v41 }
 0x225   : > { %v392_v36 = vsel %vm391_vm3, %v390_v34, %v388_v33 }
 0x226   : > { %394 = vst.msk [vmem:[%s995_s30] sm:$0x1] %vm393_vm4, %v392_v36  ;;  %419 = vmax.xlane.f32.xlu1 %v418_v35 }
 0x291   : > { %v405_v38 = vpop.xlane.xlu0 %404 }
 0x292   : > { %vm406_vm5 = vcmp.eq.f32.partialorder %v403_v24, %v405_v38  ;;  %v411_v45 = vcvt.f32.s32 %v405_v38 }
 0x293   : > { %v407_v40 = vsel %vm406_vm5, %v402_v39, -inf }
 0x294   : > { %408 = vmax.xlane.f32.xlu2 %v407_v40  ;;  %v412_v48 = vshll.u32 %v411_v45, 16 }
 0x299   : > { %v420_v42 = vpop.xlane.xlu1 %419 }
 0x29a   : > { %vm421_vm6 = vcmp.eq.f32.partialorder %v418_v35, %v420_v42  ;;  %v426_v51 = vcvt.f32.s32 %v420_v42 }
 0x29b   : > { %v422_v44 = vsel %vm421_vm6, %v417_v43, -inf }
 0x29c   : > { %423 = vmax.xlane.f32.xlu0 %v422_v44  ;;  %v427_v56 = vshll.u32 %v426_v51, 16 }
 0x307   : > { %v409_v46 = vpop.xlane.xlu2 %408 }
 0x308   : > { %v410_v49 = vcvt.f32.s32 %v409_v46 }
 0x30a   : > { %v413_v50 = vadd.s32 %v412_v48, %v410_v49 }
 0x30c   : > { %vm437_vm7 = vcmp.eq.s32.totalorder %v397_v17, %v413_v50  ;;  %v429_v57 = vand.u32 15, %v413_v50 }
 0x30d   : > { %v439_v52 = vsel %vm437_vm7, 2147483648, %v397_v17 }
 0x30e   : > { %v441_v53 = vsel %vm353_vm13, %v439_v52, 2147483648  ;;  %v431_v61 = vsub.s32 15, %v429_v57 }
 0x30f   : > { %v424_v54 = vpop.xlane.xlu0 %423  ;;  %v443_v55 = vshra.s32 %v441_v53, 16  ;;  %v442_v7 = vand.u32 65535, %v441_v53 }
 0x310   : > { %v425_v58 = vcvt.f32.s32 %v424_v54  ;;  %v433_v3 = vperm.slane %v431_v61, %v977_v47 }
 0x311   : > { %v445_v59 = vcvt.s32.f32 %v443_v55  ;;  %v444_v9 = vcvt.s32.f32 %v442_v7 }
 0x312   : > { %v428_v60 = vadd.s32 %v427_v56, %v425_v58 }
 0x313   : > { %446 = vmax.xlane.f32.xlu1 %v445_v59 }
 0x314   : > { %v430_v62 = vand.u32 15, %v428_v60  ;;  %vm438_vm8 = vcmp.eq.s32.totalorder %v398_v29, %v428_v60 }
 0x315   : > { %v440_v63 = vsel %vm438_vm8, 2147483648, %v398_v29 }
 0x316   : > { %v432_v0 = vsub.s32 15, %v430_v62  ;;  %v456_v1 = vsel %vm353_vm13, %v440_v63, 2147483648 }
 0x317   : > { %v458_v2 = vshra.s32 %v456_v1, 16  ;;  %v457_v11 = vand.u32 65535, %v456_v1 }
 0x318   : > { %v434_v4 = vperm.slane %v432_v0, %v987_v27 }
 0x319   : > { %v460_v5 = vcvt.s32.f32 %v458_v2  ;;  %v459_v13 = vcvt.s32.f32 %v457_v11 }
 0x31a   : > { %v435_v6 = vsel %vm391_vm3, %v434_v4, %v433_v3 }
 0x31b   : > { %436 = vst.msk [vmem:[%s995_s30 + $0x1] sm:$0x1] %vm393_vm4, %v435_v6  ;;  %461 = vmax.xlane.f32.xlu2 %v460_v5 }
 0x386   : > { %v447_v8 = vpop.xlane.xlu1 %446 }
 0x387   : > { %vm448_vm9 = vcmp.eq.f32.partialorder %v445_v59, %v447_v8  ;;  %v453_v15 = vcvt.f32.s32 %v447_v8 }
 0x388   : > { %v449_v10 = vsel %vm448_vm9, %v444_v9, -inf }
 0x389   : > { %450 = vmax.xlane.f32.xlu0 %v449_v10  ;;  %v454_v17 = vshll.u32 %v453_v15, 16 }
 0x38e   : > { %v462_v12 = vpop.xlane.xlu2 %461 }
 0x38f   : > { %vm463_vm10 = vcmp.eq.f32.partialorder %v460_v5, %v462_v12  ;;  %v468_v20 = vcvt.f32.s32 %v462_v12 }
 0x390   : > { %v464_v14 = vsel %vm463_vm10, %v459_v13, -inf }
 0x391   : > { %465 = vmax.xlane.f32.xlu1 %v464_v14  ;;  %v469_v25 = vshll.u32 %v468_v20, 16 }
 0x3fc   : > { %v451_v16 = vpop.xlane.xlu0 %450 }
 0x3fd   : > { %v452_v18 = vcvt.f32.s32 %v451_v16 }
 0x3ff   : > { %v455_v19 = vadd.s32 %v454_v17, %v452_v18 }
 0x401   : > { %vm479_vm11 = vcmp.eq.s32.totalorder %v439_v52, %v455_v19  ;;  %v471_v26 = vand.u32 15, %v455_v19 }
 0x402   : > { %v481_v21 = vsel %vm479_vm11, 2147483648, %v439_v52 }
 0x403   : > { %v483_v22 = vsel %vm353_vm13, %v481_v21, 2147483648  ;;  %v473_v31 = vsub.s32 15, %v471_v26 }
 0x404   : > { %v466_v23 = vpop.xlane.xlu1 %465  ;;  %v485_v24 = vshra.s32 %v483_v22, 16  ;;  %v484_v41 = vand.u32 65535, %v483_v22 }
 0x405   : > { %v467_v28 = vcvt.f32.s32 %v466_v23  ;;  %v475_v37 = vperm.slane %v473_v31, %v977_v47 }
 0x406   : > { %v487_v29 = vcvt.s32.f32 %v485_v24  ;;  %v486_v43 = vcvt.s32.f32 %v484_v41 }
 0x407   : > { %v470_v30 = vadd.s32 %v469_v25, %v467_v28 }
 0x408   : > { %488 = vmax.xlane.f32.xlu2 %v487_v29 }
 0x409   : > { %v472_v32 = vand.u32 15, %v470_v30  ;;  %vm480_vm12 = vcmp.eq.s32.totalorder %v440_v63, %v470_v30 }
 0x40a   : > { %v482_v33 = vsel %vm480_vm12, 2147483648, %v440_v63 }
 0x40b   : > { %v474_v34 = vsub.s32 15, %v472_v32  ;;  %v498_v35 = vsel %vm353_vm13, %v482_v33, 2147483648 }
 0x40c   : > { %v500_v36 = vshra.s32 %v498_v35, 16  ;;  %v499_v45 = vand.u32 65535, %v498_v35 }
 0x40d   : > { %v476_v38 = vperm.slane %v474_v34, %v987_v27 }
 0x40e   : > { %v502_v39 = vcvt.s32.f32 %v500_v36  ;;  %v501_v48 = vcvt.s32.f32 %v499_v45 }
 0x40f   : > { %v477_v40 = vsel %vm391_vm3, %v476_v38, %v475_v37 }
 0x410   : > { %478 = vst.msk [vmem:[%s995_s30 + $0x2] sm:$0x1] %vm393_vm4, %v477_v40  ;;  %503 = vmax.xlane.f32.xlu0 %v502_v39 }
 0x47b   : > { %v489_v42 = vpop.xlane.xlu2 %488 }
 0x47c   : > { %vm490_vm14 = vcmp.eq.f32.partialorder %v487_v29, %v489_v42  ;;  %v495_v50 = vcvt.f32.s32 %v489_v42 }
 0x47d   : > { %v491_v44 = vsel %vm490_vm14, %v486_v43, -inf }
 0x47e   : > { %492 = vmax.xlane.f32.xlu1 %v491_v44  ;;  %v496_v52 = vshll.u32 %v495_v50, 16 }
 0x483   : > { %v504_v46 = vpop.xlane.xlu0 %503 }
 0x484   : > { %vm505_vm15 = vcmp.eq.f32.partialorder %v502_v39, %v504_v46  ;;  %v510_v55 = vcvt.f32.s32 %v504_v46 }
 0x485   : > { %v506_v49 = vsel %vm505_vm15, %v501_v48, -inf }
 0x486   : > { %507 = vmax.xlane.f32.xlu2 %v506_v49  ;;  %v511_v60 = vshll.u32 %v510_v55, 16 }
 0x4f1   : > { %v493_v51 = vpop.xlane.xlu1 %492 }
 0x4f2   : > { %v494_v53 = vcvt.f32.s32 %v493_v51 }
 0x4f4   : > { %v497_v54 = vadd.s32 %v496_v52, %v494_v53 }
 0x4f6   : > { %vm521_vm0 = vcmp.eq.s32.totalorder %v481_v21, %v497_v54  ;;  %v513_v61 = vand.u32 15, %v497_v54 }
 0x4f7   : > { %v523_v56 = vsel %vm521_vm0, 2147483648, %v481_v21 }
 0x4f8   : > { %v525_v57 = vsel %vm353_vm13, %v523_v56, 2147483648  ;;  %v515_v1 = vsub.s32 15, %v513_v61 }
 0x4f9   : > { %v508_v58 = vpop.xlane.xlu2 %507  ;;  %v527_v59 = vshra.s32 %v525_v57, 16  ;;  %v526_v11 = vand.u32 65535, %v525_v57 }
 0x4fa   : > { %v509_v62 = vcvt.f32.s32 %v508_v58  ;;  %v517_v7 = vperm.slane %v515_v1, %v977_v47 }
 0x4fb   : > { %v529_v63 = vcvt.s32.f32 %v527_v59  ;;  %v528_v13 = vcvt.s32.f32 %v526_v11 }
 0x4fc   : > { %v512_v0 = vadd.s32 %v511_v60, %v509_v62 }
 0x4fd   : > { %530 = vmax.xlane.f32.xlu0 %v529_v63 }
 0x4fe   : > { %v514_v2 = vand.u32 15, %v512_v0  ;;  %vm522_vm1 = vcmp.eq.s32.totalorder %v482_v33, %v512_v0 }
 0x4ff   : > { %v524_v3 = vsel %vm522_vm1, 2147483648, %v482_v33 }
 0x500   : > { %v516_v4 = vsub.s32 15, %v514_v2  ;;  %v540_v5 = vsel %vm353_vm13, %v524_v3, 2147483648 }
 0x501   : > { %v542_v6 = vshra.s32 %v540_v5, 16  ;;  %v541_v15 = vand.u32 65535, %v540_v5 }
 0x502   : > { %v518_v8 = vperm.slane %v516_v4, %v987_v27 }
 0x503   : > { %v544_v9 = vcvt.s32.f32 %v542_v6  ;;  %v543_v17 = vcvt.s32.f32 %v541_v15 }
 0x504   : > { %v519_v10 = vsel %vm391_vm3, %v518_v8, %v517_v7 }
 0x505   : > { %520 = vst.msk [vmem:[%s995_s30 + $0x3] sm:$0x1] %vm393_vm4, %v519_v10  ;;  %545 = vmax.xlane.f32.xlu1 %v544_v9 }
 0x570   : > { %v531_v12 = vpop.xlane.xlu0 %530 }
 0x571   : > { %vm532_vm2 = vcmp.eq.f32.partialorder %v529_v63, %v531_v12  ;;  %v537_v19 = vcvt.f32.s32 %v531_v12 }
 0x572   : > { %v533_v14 = vsel %vm532_vm2, %v528_v13, -inf }
 0x573   : > { %534 = vmax.xlane.f32.xlu2 %v533_v14  ;;  %v538_v21 = vshll.u32 %v537_v19, 16 }
 0x578   : > { %v546_v16 = vpop.xlane.xlu1 %545 }
 0x579   : > { %vm547_vm5 = vcmp.eq.f32.partialorder %v544_v9, %v546_v16  ;;  %v552_v24 = vcvt.f32.s32 %v546_v16 }
 0x57a   : > { %v548_v18 = vsel %vm547_vm5, %v543_v17, -inf }
 0x57b   : > { %549 = vmax.xlane.f32.xlu0 %v548_v18  ;;  %v553_v30 = vshll.u32 %v552_v24, 16 }
 0x5e6   : > { %v535_v20 = vpop.xlane.xlu2 %534 }
 0x5e7   : > { %v536_v22 = vcvt.f32.s32 %v535_v20 }
 0x5e9   : > { %v539_v23 = vadd.s32 %v538_v21, %v536_v22 }
 0x5eb   : > { %vm563_vm6 = vcmp.eq.s32.totalorder %v523_v56, %v539_v23  ;;  %v555_v31 = vand.u32 15, %v539_v23 }
 0x5ec   : > { %v565_v25 = vsel %vm563_vm6, 2147483648, %v523_v56 }
 0x5ed   : > { %v567_v26 = vsel %vm353_vm13, %v565_v25, 2147483648  ;;  %v557_v35 = vsub.s32 15, %v555_v31 }
 0x5ee   : > { %v550_v28 = vpop.xlane.xlu0 %549  ;;  %v569_v29 = vshra.s32 %v567_v26, 16  ;;  %v568_v45 = vand.u32 65535, %v567_v26 }
 0x5ef   : > { %v551_v32 = vcvt.f32.s32 %v550_v28  ;;  %v559_v41 = vperm.slane %v557_v35, %v977_v47 }
 0x5f0   : > { %v571_v33 = vcvt.s32.f32 %v569_v29  ;;  %v570_v48 = vcvt.s32.f32 %v568_v45 }
 0x5f1   : > { %v554_v34 = vadd.s32 %v553_v30, %v551_v32 }
 0x5f2   : > { %572 = vmax.xlane.f32.xlu1 %v571_v33 }
 0x5f3   : > { %v556_v36 = vand.u32 15, %v554_v34  ;;  %vm564_vm7 = vcmp.eq.s32.totalorder %v524_v3, %v554_v34 }
 0x5f4   : > { %v566_v37 = vsel %vm564_vm7, 2147483648, %v524_v3 }
 0x5f5   : > { %v558_v38 = vsub.s32 15, %v556_v36  ;;  %v582_v39 = vsel %vm353_vm13, %v566_v37, 2147483648 }
 0x5f6   : > { %v584_v40 = vshra.s32 %v582_v39, 16  ;;  %v583_v50 = vand.u32 65535, %v582_v39 }
 0x5f7   : > { %v560_v42 = vperm.slane %v558_v38, %v987_v27 }
 0x5f8   : > { %v586_v43 = vcvt.s32.f32 %v584_v40  ;;  %v585_v52 = vcvt.s32.f32 %v583_v50 }
 0x5f9   : > { %v561_v44 = vsel %vm391_vm3, %v560_v42, %v559_v41 }
 0x5fa   : > { %562 = vst.msk [vmem:[%s995_s30 + $0x4] sm:$0x1] %vm393_vm4, %v561_v44  ;;  %587 = vmax.xlane.f32.xlu2 %v586_v43 }
 0x665   : > { %v573_v46 = vpop.xlane.xlu1 %572 }
 0x666   : > { %vm574_vm8 = vcmp.eq.f32.partialorder %v571_v33, %v573_v46  ;;  %v579_v54 = vcvt.f32.s32 %v573_v46 }
 0x667   : > { %v575_v49 = vsel %vm574_vm8, %v570_v48, -inf }
 0x668   : > { %576 = vmax.xlane.f32.xlu0 %v575_v49  ;;  %v580_v56 = vshll.u32 %v579_v54, 16 }
 0x66d   : > { %v588_v51 = vpop.xlane.xlu2 %587 }
 0x66e   : > { %vm589_vm9 = vcmp.eq.f32.partialorder %v586_v43, %v588_v51  ;;  %v594_v59 = vcvt.f32.s32 %v588_v51 }
 0x66f   : > { %v590_v53 = vsel %vm589_vm9, %v585_v52, -inf }
 0x670   : > { %591 = vmax.xlane.f32.xlu1 %v590_v53  ;;  %v595_v0 = vshll.u32 %v594_v59, 16 }
 0x6db   : > { %v577_v55 = vpop.xlane.xlu0 %576 }
 0x6dc   : > { %v578_v57 = vcvt.f32.s32 %v577_v55 }
 0x6de   : > { %v581_v58 = vadd.s32 %v580_v56, %v578_v57 }
 0x6e0   : > { %vm605_vm10 = vcmp.eq.s32.totalorder %v565_v25, %v581_v58  ;;  %v597_v1 = vand.u32 15, %v581_v58 }
 0x6e1   : > { %v607_v60 = vsel %vm605_vm10, 2147483648, %v565_v25 }
 0x6e2   : > { %v609_v61 = vsel %vm353_vm13, %v607_v60, 2147483648  ;;  %v599_v5 = vsub.s32 15, %v597_v1 }
 0x6e3   : > { %v592_v62 = vpop.xlane.xlu1 %591  ;;  %v611_v63 = vshra.s32 %v609_v61, 16  ;;  %v610_v15 = vand.u32 65535, %v609_v61 }
 0x6e4   : > { %v593_v2 = vcvt.f32.s32 %v592_v62  ;;  %v601_v11 = vperm.slane %v599_v5, %v977_v47 }
 0x6e5   : > { %v613_v3 = vcvt.s32.f32 %v611_v63  ;;  %v612_v17 = vcvt.s32.f32 %v610_v15 }
 0x6e6   : > { %v596_v4 = vadd.s32 %v595_v0, %v593_v2 }
 0x6e7   : > { %614 = vmax.xlane.f32.xlu2 %v613_v3 }
 0x6e8   : > { %v598_v6 = vand.u32 15, %v596_v4  ;;  %vm606_vm11 = vcmp.eq.s32.totalorder %v566_v37, %v596_v4 }
 0x6e9   : > { %v608_v7 = vsel %vm606_vm11, 2147483648, %v566_v37 }
 0x6ea   : > { %v600_v8 = vsub.s32 15, %v598_v6  ;;  %v624_v9 = vsel %vm353_vm13, %v608_v7, 2147483648 }
 0x6eb   : > { %v626_v10 = vshra.s32 %v624_v9, 16  ;;  %v625_v19 = vand.u32 65535, %v624_v9 }
 0x6ec   : > { %v602_v12 = vperm.slane %v600_v8, %v987_v27 }
 0x6ed   : > { %v628_v13 = vcvt.s32.f32 %v626_v10  ;;  %v627_v21 = vcvt.s32.f32 %v625_v19 }
 0x6ee   : > { %v603_v14 = vsel %vm391_vm3, %v602_v12, %v601_v11 }
 0x6ef   : > { %604 = vst.msk [vmem:[%s995_s30 + $0x5] sm:$0x1] %vm393_vm4, %v603_v14  ;;  %629 = vmax.xlane.f32.xlu0 %v628_v13 }
 0x75a   : > { %v615_v16 = vpop.xlane.xlu2 %614 }
 0x75b   : > { %vm616_vm12 = vcmp.eq.f32.partialorder %v613_v3, %v615_v16  ;;  %v621_v23 = vcvt.f32.s32 %v615_v16 }
 0x75c   : > { %v617_v18 = vsel %vm616_vm12, %v612_v17, -inf }
 0x75d   : > { %618 = vmax.xlane.f32.xlu1 %v617_v18  ;;  %v622_v25 = vshll.u32 %v621_v23, 16 }
 0x762   : > { %v630_v20 = vpop.xlane.xlu0 %629 }
 0x763   : > { %vm631_vm14 = vcmp.eq.f32.partialorder %v628_v13, %v630_v20  ;;  %v636_v29 = vcvt.f32.s32 %v630_v20 }
 0x764   : > { %v632_v22 = vsel %vm631_vm14, %v627_v21, -inf }
 0x765   : > { %633 = vmax.xlane.f32.xlu2 %v632_v22  ;;  %v637_v34 = vshll.u32 %v636_v29, 16 }
 0x7d0   : > { %v619_v24 = vpop.xlane.xlu1 %618 }
 0x7d1   : > { %v620_v26 = vcvt.f32.s32 %v619_v24 }
 0x7d3   : > { %v623_v28 = vadd.s32 %v622_v25, %v620_v26 }
 0x7d5   : > { %vm647_vm15 = vcmp.eq.s32.totalorder %v607_v60, %v623_v28  ;;  %v639_v35 = vand.u32 15, %v623_v28 }
 0x7d6   : > { %v649_v30 = vsel %vm647_vm15, 2147483648, %v607_v60 }
 0x7d7   : > { %v651_v31 = vsel %vm353_vm13, %v649_v30, 2147483648  ;;  %v641_v39 = vsub.s32 15, %v639_v35 }
 0x7d8   : > { %v634_v32 = vpop.xlane.xlu2 %633  ;;  %v653_v33 = vshra.s32 %v651_v31, 16  ;;  %v652_v50 = vand.u32 65535, %v651_v31 }
 0x7d9   : > { %v635_v36 = vcvt.f32.s32 %v634_v32  ;;  %v643_v45 = vperm.slane %v641_v39, %v977_v47 }
 0x7da   : > { %v655_v37 = vcvt.s32.f32 %v653_v33  ;;  %v654_v52 = vcvt.s32.f32 %v652_v50 }
 0x7db   : > { %v638_v38 = vadd.s32 %v637_v34, %v635_v36 }
 0x7dc   : > { %656 = vmax.xlane.f32.xlu0 %v655_v37 }
 0x7dd   : > { %v640_v40 = vand.u32 15, %v638_v38  ;;  %vm648_vm0 = vcmp.eq.s32.totalorder %v608_v7, %v638_v38 }
 0x7de   : > { %v650_v41 = vsel %vm648_vm0, 2147483648, %v608_v7 }
 0x7df   : > { %v642_v42 = vsub.s32 15, %v640_v40  ;;  %v666_v43 = vsel %vm353_vm13, %v650_v41, 2147483648 }
 0x7e0   : > { %v668_v44 = vshra.s32 %v666_v43, 16  ;;  %v667_v54 = vand.u32 65535, %v666_v43 }
 0x7e1   : > { %v644_v46 = vperm.slane %v642_v42, %v987_v27 }
 0x7e2   : > { %v670_v48 = vcvt.s32.f32 %v668_v44  ;;  %v669_v56 = vcvt.s32.f32 %v667_v54 }
 0x7e3   : > { %v645_v49 = vsel %vm391_vm3, %v644_v46, %v643_v45 }
 0x7e4   : > { %646 = vst.msk [vmem:[%s995_s30 + $0x6] sm:$0x1] %vm393_vm4, %v645_v49  ;;  %671 = vmax.xlane.f32.xlu1 %v670_v48 }
 0x84f   : > { %v657_v51 = vpop.xlane.xlu0 %656 }
 0x850   : > { %vm658_vm1 = vcmp.eq.f32.partialorder %v655_v37, %v657_v51  ;;  %v663_v58 = vcvt.f32.s32 %v657_v51 }
 0x851   : > { %v659_v53 = vsel %vm658_vm1, %v654_v52, -inf }
 0x852   : > { %660 = vmax.xlane.f32.xlu2 %v659_v53  ;;  %v664_v60 = vshll.u32 %v663_v58, 16 }
 0x857   : > { %v672_v55 = vpop.xlane.xlu1 %671 }
 0x858   : > { %vm673_vm2 = vcmp.eq.f32.partialorder %v670_v48, %v672_v55  ;;  %v678_v63 = vcvt.f32.s32 %v672_v55 }
 0x859   : > { %v674_v57 = vsel %vm673_vm2, %v669_v56, -inf }
 0x85a   : > { %675 = vmax.xlane.f32.xlu0 %v674_v57  ;;  %v679_v4 = vshll.u32 %v678_v63, 16 }
 0x8c5   : > { %v661_v59 = vpop.xlane.xlu2 %660 }
 0x8c6   : > { %v662_v61 = vcvt.f32.s32 %v661_v59 }
 0x8c8   : > { %v665_v62 = vadd.s32 %v664_v60, %v662_v61 }
 0x8ca   : > { %vm689_vm5 = vcmp.eq.s32.totalorder %v649_v30, %v665_v62  ;;  %v681_v5 = vand.u32 15, %v665_v62 }
 0x8cb   : > { %v691_v0 = vsel %vm689_vm5, 2147483648, %v649_v30 }
 0x8cc   : > { %v693_v1 = vsel %vm353_vm13, %v691_v0, 2147483648  ;;  %v683_v9 = vsub.s32 15, %v681_v5 }
 0x8cd   : > { %v676_v2 = vpop.xlane.xlu0 %675  ;;  %v695_v3 = vshra.s32 %v693_v1, 16  ;;  %v694_v19 = vand.u32 65535, %v693_v1 }
 0x8ce   : > { %v677_v6 = vcvt.f32.s32 %v676_v2  ;;  %v685_v15 = vperm.slane %v683_v9, %v977_v47 }
 0x8cf   : > { %v697_v7 = vcvt.s32.f32 %v695_v3  ;;  %v696_v21 = vcvt.s32.f32 %v694_v19 }
 0x8d0   : > { %v680_v8 = vadd.s32 %v679_v4, %v677_v6 }
 0x8d1   : > { %698 = vmax.xlane.f32.xlu1 %v697_v7 }
 0x8d2   : > { %v682_v10 = vand.u32 15, %v680_v8  ;;  %vm690_vm6 = vcmp.eq.s32.totalorder %v650_v41, %v680_v8 }
 0x8d3   : > { %v692_v11 = vsel %vm690_vm6, 2147483648, %v650_v41 }
 0x8d4   : > { %v684_v12 = vsub.s32 15, %v682_v10  ;;  %v708_v13 = vsel %vm353_vm13, %v692_v11, 2147483648 }
 0x8d5   : > { %v710_v14 = vshra.s32 %v708_v13, 16  ;;  %v709_v23 = vand.u32 65535, %v708_v13 }
 0x8d6   : > { %v686_v16 = vperm.slane %v684_v12, %v987_v27 }
 0x8d7   : > { %v712_v17 = vcvt.s32.f32 %v710_v14  ;;  %v711_v25 = vcvt.s32.f32 %v709_v23 }
 0x8d8   : > { %v687_v18 = vsel %vm391_vm3, %v686_v16, %v685_v15 }
 0x8d9   : > { %688 = vst.msk [vmem:[%s995_s30 + $0x7] sm:$0x1] %vm393_vm4, %v687_v18  ;;  %713 = vmax.xlane.f32.xlu2 %v712_v17 }
 0x944   : > { %v699_v20 = vpop.xlane.xlu1 %698 }
 0x945   : > { %vm700_vm7 = vcmp.eq.f32.partialorder %v697_v7, %v699_v20  ;;  %v705_v28 = vcvt.f32.s32 %v699_v20 }
 0x946   : > { %v701_v22 = vsel %vm700_vm7, %v696_v21, -inf }
 0x947   : > { %702 = vmax.xlane.f32.xlu0 %v701_v22  ;;  %v706_v31 = vshll.u32 %v705_v28, 16 }
 0x94c   : > { %v714_v24 = vpop.xlane.xlu2 %713 }
 0x94d   : > { %vm715_vm13 = vcmp.eq.f32.partialorder %v712_v17, %v714_v24  ;;  %v720_v32 = vcvt.f32.s32 %v714_v24 }
 0x94e   : > { %v716_v26 = vsel %vm715_vm13, %v711_v25, -inf }
 0x94f   : > { %717 = vmax.xlane.f32.xlu1 %v716_v26  ;;  %v721_v35 = vshll.u32 %v720_v32, 16 }
 0x9ba   : > { %v703_v29 = vpop.xlane.xlu0 %702 }
 0x9bb   : > { %v704_v30 = vcvt.f32.s32 %v703_v29 }
 0x9bd   : > { %v707_v33 = vadd.s32 %v706_v31, %v704_v30 }
 0x9bf   : > { %v723_v36 = vand.u32 15, %v707_v33 }
 0x9c1   : > { %v725_v39 = vsub.s32 15, %v723_v36 }
 0x9c2   : > { %v718_v34 = vpop.xlane.xlu1 %717 }
 0x9c3   : > { %v719_v37 = vcvt.f32.s32 %v718_v34  ;;  %v727_v42 = vperm.slane %v725_v39, %v977_v47 }
 0x9c5   : > { %v722_v38 = vadd.s32 %v721_v35, %v719_v37 }
 0x9c7   : > { %v724_v40 = vand.u32 15, %v722_v38 }
 0x9c9   : > { %v726_v41 = vsub.s32 15, %v724_v40 }
 0x9cb   : > { %v728_v43 = vperm.slane %v726_v41, %v987_v27 }
 0x9cd   : > { %v729_v44 = vsel %vm391_vm3, %v728_v43, %v727_v42 }
 0x9ce   : > { %730 = vst.msk [vmem:[%s995_s30 + $0x8] sm:$0x1] %vm393_vm4, %v729_v44 }
 0x9cf PF: > { %s13_s14 = sadd.s32 1, %s913_s14   ;;  %s1069_s12 = smov %s909_s13 }
 0x9d0   : > { %p10_p5 = scmp.ge.s32.totalorder %s13_s14, 4   ;;  %s1070_s13 = smov %s1072_s15 }
 0x9d2   :  { %12 = sbr.rel (!%p10_p5) target bundleno = 2 (0x2), region = 68 }

</bundles_post_ra>
